<compile_context>
chip_gen: v7x
topology: tpu7x:2x2x1
jax: 0.10.0
libtpu: 0.0.40
codegen_flags: <defaults>
</compile_context>

<pallas_src>
import functools
import math

import jax
import jax.numpy as jnp
from jax import lax
from jax.experimental import pallas as pl
from jax.experimental.pallas import tpu as pltpu


# ---------------------------------------------------------------------------
# helpers
# ---------------------------------------------------------------------------

def _pick_tile(total, max_tile):
    """Largest tile <= max_tile dividing `total` and a multiple of 8 (sublane
    rule); falls back to the full dimension (always a legal block)."""
    if total <= max_tile:
        return total
    t = (max_tile // 8) * 8
    while t >= 8:
        if total % t == 0:
            return t
        t -= 8
    return total


def _vmem_budget(footprint_bytes):
    """Scoped-VMEM request from the block footprint, capped per generation."""
    try:
        cap = pltpu.get_tpu_info().vmem_capacity_bytes
    except Exception:
        cap = 64 * 1024 * 1024                 # conservative (v7x-sized) fallback
    ceiling = (cap * 3) // 4                   # headroom for compiler scratch
    want = max(2 * footprint_bytes, 32 * 1024 * 1024)
    return int(min(want, ceiling))


def _const_spec(arr):
    """Grid-invariant weight/bias: constant block index, single-buffered."""
    nd = arr.ndim
    idx = lambda *_: (0,) * nd
    try:
        return pl.BlockSpec(arr.shape, idx, pipeline_mode=pl.Buffered(1))
    except TypeError:                          # BlockSpec without pipeline_mode
        return pl.BlockSpec(arr.shape, idx)


# ---------------------------------------------------------------------------
# Kernel 1: fused QKV projection
# ---------------------------------------------------------------------------

def _qkv_proj_kernel(x_ref, wq_ref, bq_ref, wk_ref, bk_ref, wv_ref, bv_ref,
                     q_ref, k_ref, v_ref, *, scale):
    x = x_ref[0].astype(jnp.bfloat16)                                  # (tr, D)
    q = jnp.dot(x, wq_ref[...], preferred_element_type=jnp.float32) + bq_ref[...]
    k = jnp.dot(x, wk_ref[...], preferred_element_type=jnp.float32) + bk_ref[...]
    v = jnp.dot(x, wv_ref[...], preferred_element_type=jnp.float32) + bv_ref[...]
    # Single bf16 cast right after the bias add; fold 1/sqrt(dk) into q here.
    q_ref[0] = (q * scale).astype(q_ref.dtype)
    k_ref[0] = k.astype(k_ref.dtype)
    v_ref[0] = v.astype(v_ref.dtype)


def _qkv_projection(x, wq, bq, wk, bk, wv, bv, *, dim_k, row_tile):
    B, S, D = x.shape
    HDK = wq.shape[1]
    HDV = wv.shape[1]
    tr = _pick_tile(S, row_tile)
    scale = 1.0 / math.sqrt(dim_k)

    n_out = 2 * HDK + HDV
    footprint = (
        2 * tr * D * x.dtype.itemsize      # x tile, double-buffered
        + D * n_out * 2                    # bf16 weights, single-buffered
        + n_out * 4                        # f32 biases
        + 2 * tr * n_out * 2               # bf16 q/k/v out tiles, double-buffered
        + tr * n_out * 4                   # f32 matmul results before the cast
    )

    kernel = functools.partial(_qkv_proj_kernel, scale=scale)
    return pl.pallas_call(
        kernel,
        out_shape=(
            jax.ShapeDtypeStruct((B, S, HDK), jnp.bfloat16),
            jax.ShapeDtypeStruct((B, S, HDK), jnp.bfloat16),
            jax.ShapeDtypeStruct((B, S, HDV), jnp.bfloat16),
        ),
        grid_spec=pltpu.PrefetchScalarGridSpec(
            num_scalar_prefetch=0,
            grid=(B, S // tr),
            in_specs=[
                pl.BlockSpec((1, tr, D), lambda b, r: (b, r, 0)),
                _const_spec(wq), _const_spec(bq),
                _const_spec(wk), _const_spec(bk),
                _const_spec(wv), _const_spec(bv),
            ],
            out_specs=(
                pl.BlockSpec((1, tr, HDK), lambda b, r: (b, r, 0)),
                pl.BlockSpec((1, tr, HDK), lambda b, r: (b, r, 0)),
                pl.BlockSpec((1, tr, HDV), lambda b, r: (b, r, 0)),
            ),
        ),
        compiler_params=pltpu.CompilerParams(
            dimension_semantics=("parallel", "parallel"),
            vmem_limit_bytes=_vmem_budget(footprint)),
    )(x, wq, bq, wk, bk, wv, bv)


# ---------------------------------------------------------------------------
# Kernel 2: flash attention (online softmax) + folded output projection
# ---------------------------------------------------------------------------

def _flash_attn_kernel(q_ref, k_ref, v_ref, wo_ref, bo_ref, out_ref,
                       m_sc, l_sc, acc_sc, *, num_heads, dim_k, dim_v, tq, tkv):
    qi = pl.program_id(1)
    ki = pl.program_id(2)
    last_kv = pl.num_programs(2) - 1

    @pl.when(ki == 0)
    def _():
        m_sc[...] = jnp.full(m_sc.shape, -1e30, dtype=jnp.float32)
        l_sc[...] = jnp.zeros(l_sc.shape, dtype=jnp.float32)
        acc_sc[...] = jnp.zeros(acc_sc.shape, dtype=jnp.float32)

    # Additive causal mask for this (q-tile, kv-tile) pair, hoisted once and
    # shared by all heads (vadd per head instead of per-head vselect).
    row = qi * tq + lax.broadcasted_iota(jnp.int32, (tq, tkv), 0)
    col = ki * tkv + lax.broadcasted_iota(jnp.int32, (tq, tkv), 1)
    mask_bias = jnp.where(col > row, jnp.float32(-1e30), jnp.float32(0.0))

    # Skip kv tiles lying entirely above the causal diagonal (zero contribution).
    @pl.when(ki * tkv <= qi * tq + (tq - 1))
    def _():
        q = q_ref[0]                     # (tq,  H*dk) bf16, pre-scaled
        k = k_ref[0]                     # (tkv, H*dk) bf16
        v = v_ref[0]                     # (tkv, H*dv) bf16
        # TODO(synk): lax.fori_loop / head grid axis for large H; static unroll
        # is fine at H=4.
        for h in range(num_heads):
            qh = q[:, h * dim_k:(h + 1) * dim_k]
            kh = k[:, h * dim_k:(h + 1) * dim_k]
            vh = v[:, h * dim_v:(h + 1) * dim_v]
            s = lax.dot_general(qh, kh, (((1,), (1,)), ((), ())),
                                preferred_element_type=jnp.float32)   # (tq, tkv)
            s = s + mask_bias
            m_prev = m_sc[h]
            m_new = jnp.maximum(m_prev, jnp.max(s, axis=-1, keepdims=True))
            alpha = jnp.exp(m_prev - m_new)
            p = jnp.exp(s - m_new)
            l_sc[h] = alpha * l_sc[h] + jnp.sum(p, axis=-1, keepdims=True)
            acc_sc[h] = alpha * acc_sc[h] + jnp.dot(
                p.astype(jnp.bfloat16), vh, preferred_element_type=jnp.float32)
            m_sc[h] = m_new

    @pl.when(ki == last_kv)
    def _():
        # linear_out(concat_h ctx_h) == sum_h ctx_h @ Wo_h (+ bias).
        # TODO(synk): single full-width output matmul when dv % 128 == 0.
        y = jnp.zeros((tq, out_ref.shape[-1]), jnp.float32)
        for h in range(num_heads):
            ctx = acc_sc[h] * pl.reciprocal(l_sc[h], approx=True)      # (tq, dv)
            y = y + jnp.dot(ctx.astype(jnp.bfloat16), wo_ref[h],
                            preferred_element_type=jnp.float32)
        out_ref[0] = (y + bo_ref[...]).astype(out_ref.dtype)


def _flash_attention(q, k, v, wo, bo, out_dtype, *, num_heads, dim_k, dim_v,
                     q_tile, kv_tile):
    B, S, HDK = q.shape
    HDV = v.shape[-1]
    D = wo.shape[-1]
    tq = _pick_tile(S, q_tile)
    tkv = _pick_tile(S, kv_tile)

    footprint = (
        2 * tq * HDK * 2                                   # q tile (bf16, 2 bufs)
        + 2 * tkv * (HDK + HDV) * 2                        # k/v tiles (bf16, 2 bufs)
        + HDV * D * 2 + D * 4                              # wo (single) + bo
        + num_heads * tq * (dim_v + 2) * 4                 # m/l/acc scratch
        + 2 * tq * D * jnp.dtype(out_dtype).itemsize       # out tile (2 bufs)
        + 2 * tq * tkv * 4                                 # score/prob temporaries
    )

    kernel = functools.partial(_flash_attn_kernel, num_heads=num_heads,
                               dim_k=dim_k, dim_v=dim_v, tq=tq, tkv=tkv)
    return pl.pallas_call(
        kernel,
        out_shape=jax.ShapeDtypeStruct((B, S, D), out_dtype),
        grid_spec=pltpu.PrefetchScalarGridSpec(
            num_scalar_prefetch=0,
            grid=(B, S // tq, S // tkv),
            in_specs=[
                pl.BlockSpec((1, tq, HDK), lambda b, qi, ki: (b, qi, 0)),
                pl.BlockSpec((1, tkv, HDK), lambda b, qi, ki: (b, ki, 0)),
                pl.BlockSpec((1, tkv, HDV), lambda b, qi, ki: (b, ki, 0)),
                _const_spec(wo), _const_spec(bo),
            ],
            out_specs=pl.BlockSpec((1, tq, D), lambda b, qi, ki: (b, qi, 0)),
            scratch_shapes=[
                pltpu.VMEM((num_heads, tq, 1), jnp.float32),      # running max
                pltpu.VMEM((num_heads, tq, 1), jnp.float32),      # running denom
                pltpu.VMEM((num_heads, tq, dim_v), jnp.float32),  # running context
            ],
        ),
        compiler_params=pltpu.CompilerParams(
            dimension_semantics=("parallel", "parallel", "arbitrary"),
            vmem_limit_bytes=_vmem_budget(footprint)),
    )(q, k, v, wo, bo)


# ---------------------------------------------------------------------------
# top-level forward
# ---------------------------------------------------------------------------

def decoder_attention_forward(x, params, *, num_heads, dim_k, dim_v,
                              q_tile=256, kv_tile=256, row_tile=512):
    """x: (B, S, D). params: dict of pre-transposed f32 weights/biases.
    Returns causal MHA self-attention output (B, S, D) in x.dtype."""
    B, S, D = x.shape

    # bf16 weights -> half the weight DMA bytes; f32 accumulation via
    # preferred_element_type. W_out pre-split per head (H, dv, D) so the kernel
    # never concatenates head outputs. Biases stay f32.
    wq = params["wq"].astype(jnp.bfloat16)                  # (D, H*dk)
    wk = params["wk"].astype(jnp.bfloat16)                  # (D, H*dk)
    wv = params["wv"].astype(jnp.bfloat16)                  # (D, H*dv)
    wo = params["wo"].astype(jnp.bfloat16).reshape(num_heads, dim_v, D)
    bq, bk, bv, bo = params["bq"], params["bk"], params["bv"], params["bo"]

    q, k, v = _qkv_projection(x, wq, bq, wk, bk, wv, bv,
                              dim_k=dim_k, row_tile=row_tile)
    return _flash_attention(q, k, v, wo, bo, x.dtype,
                            num_heads=num_heads, dim_k=dim_k, dim_v=dim_v,
                            q_tile=q_tile, kv_tile=kv_tile)


# ---------------------------------------------------------------------------
# parameters / reference / demo
# ---------------------------------------------------------------------------

def _init_params(key, dim_model, num_heads, dim_k, dim_v):
    """Deterministic init mirroring nn.Linear shapes (pre-transposed)."""
    ks = jax.random.split(key, 8)

    def lin(kw, kb, fan_in, fan_out):
        bound = 1.0 / math.sqrt(fan_in)
        w = jax.random.uniform(kw, (fan_in, fan_out), jnp.float32, -bound, bound)
        b = jax.random.uniform(kb, (1, fan_out), jnp.float32, -bound, bound)
        return w, b

    wq, bq = lin(ks[0], ks[1], dim_model, num_heads * dim_k)
    wk, bk = lin(ks[2], ks[3], dim_model, num_heads * dim_k)
    wv, bv = lin(ks[4], ks[5], dim_model, num_heads * dim_v)
    wo, bo = lin(ks[6], ks[7], num_heads * dim_v, dim_model)
    return dict(wq=wq, bq=bq, wk=wk, bk=bk, wv=wv, bv=bv, wo=wo, bo=bo)


def _reference(x, p, num_heads, dim_k, dim_v):
    """Pure-JAX f32 reference matching the PyTorch MHA forward (causal)."""
    B, S, D = x.shape
    q = (x @ p["wq"] + p["bq"][0]).reshape(B, S, num_heads, dim_k).transpose(0, 2, 1, 3)
    k = (x @ p["wk"] + p["bk"][0]).reshape(B, S, num_heads, dim_k).transpose(0, 2, 1, 3)
    v = (x @ p["wv"] + p["bv"][0]).reshape(B, S, num_heads, dim_v).transpose(0, 2, 1, 3)
    qk = jnp.einsum("bnqd,bnkd->bnqk", q, k) / math.sqrt(dim_k)
    causal = jnp.triu(jnp.ones((S, S), bool), k=1)
    qk = jnp.where(causal, -jnp.inf, qk)
    w = jax.nn.softmax(qk, axis=-1)
    av = jnp.einsum("bnqk,bnkd->bnqd", w, v).transpose(0, 2, 1, 3).reshape(B, S, num_heads * dim_v)
    return av @ p["wo"] + p["bo"][0]


if __name__ == "__main__":
    # Small config: name='MHA', dim_model=32, num_heads=4, dim_k=dim_v=8.
    B, S, D = 2, 8, 32
    H, DK, DV = 4, 8, 8

    key = jax.random.PRNGKey(0)
    kx, kp = jax.random.split(key)
    x = jax.random.normal(kx, (B, S, D), jnp.float32)
    params = _init_params(kp, D, H, DK, DV)

    out = decoder_attention_forward(x, params, num_heads=H, dim_k=DK, dim_v=DV)
    out = jax.block_until_ready(out)

    ref = _reference(x, params, H, DK, DV)
    assert out.shape == (B, S, D)
    # Tolerance loosened vs the f32 reference: bf16 MXU operands + bf16 q/k/v
    # intermediates + approx EUP reciprocal in the softmax denominator.
    err = float(jnp.max(jnp.abs(out - ref)))
    assert jnp.allclose(out, ref, atol=5e-2, rtol=5e-2), (
        f"mismatch vs reference, max abs err={err}")

    print("KERNEL_OK")
</pallas_src>

<mosaic_0001>
module attributes {stable_mosaic.version = 11 : i64} {
  func.func @_qkv_proj_kernel(%arg0: i32, %arg1: i32, %arg2: memref<1x8x32xf32, #tpu.memory_space<vmem>>, %arg3: memref<32x32xbf16, #tpu.memory_space<vmem>>, %arg4: memref<1x32xf32, #tpu.memory_space<vmem>>, %arg5: memref<32x32xbf16, #tpu.memory_space<vmem>>, %arg6: memref<1x32xf32, #tpu.memory_space<vmem>>, %arg7: memref<32x32xbf16, #tpu.memory_space<vmem>>, %arg8: memref<1x32xf32, #tpu.memory_space<vmem>>, %arg9: memref<1x8x32xbf16, #tpu.memory_space<vmem>>, %arg10: memref<1x8x32xbf16, #tpu.memory_space<vmem>>, %arg11: memref<1x8x32xbf16, #tpu.memory_space<vmem>>) attributes {dimension_semantics = [#tpu.dimension_semantics<parallel>, #tpu.dimension_semantics<parallel>], iteration_bounds = array<i64: 2, 1>, scalar_prefetch = 0 : i64, scratch_operands = 0 : i64, tpu.core_type = #tpu.core_type<tc>, window_params = [{transform_indices = @transform_0, window_bounds = array<i64: 1, 8, 32>}, {pipeline_mode = #tpu.pipeline_mode<synchronous>, transform_indices = @transform_1, window_bounds = array<i64: 32, 32>}, {pipeline_mode = #tpu.pipeline_mode<synchronous>, transform_indices = @transform_2, window_bounds = array<i64: 1, 32>}, {pipeline_mode = #tpu.pipeline_mode<synchronous>, transform_indices = @transform_3, window_bounds = array<i64: 32, 32>}, {pipeline_mode = #tpu.pipeline_mode<synchronous>, transform_indices = @transform_4, window_bounds = array<i64: 1, 32>}, {pipeline_mode = #tpu.pipeline_mode<synchronous>, transform_indices = @transform_5, window_bounds = array<i64: 32, 32>}, {pipeline_mode = #tpu.pipeline_mode<synchronous>, transform_indices = @transform_6, window_bounds = array<i64: 1, 32>}, {transform_indices = @transform_7, window_bounds = array<i64: 1, 8, 32>}, {transform_indices = @transform_8, window_bounds = array<i64: 1, 8, 32>}, {transform_indices = @transform_9, window_bounds = array<i64: 1, 8, 32>}]} {
    %c0 = arith.constant 0 : index
    %c0_0 = arith.constant 0 : index
    %c0_1 = arith.constant 0 : index
    %0 = vector.load %arg2[%c0, %c0_0, %c0_1] : memref<1x8x32xf32, #tpu.memory_space<vmem>>, vector<1x8x32xf32>
    %1 = vector.shape_cast %0 : vector<1x8x32xf32> to vector<8x32xf32>
    %2 = arith.truncf %1 : vector<8x32xf32> to vector<8x32xbf16>
    %c0_2 = arith.constant 0 : index
    %c0_3 = arith.constant 0 : index
    %3 = vector.load %arg3[%c0_2, %c0_3] : memref<32x32xbf16, #tpu.memory_space<vmem>>, vector<32x32xbf16>
    %cst = arith.constant dense<0.000000e+00> : vector<8x32xf32>
    %4 = tpu.matmul %2, %3, %cst {dimension_numbers = #tpu.dot_dimension_numbers<[1], [0], [0], [1], [0, 0, 1, 1], [], []>} : vector<8x32xbf16>, vector<32x32xbf16>, vector<8x32xf32> -> vector<8x32xf32>
    %c0_4 = arith.constant 0 : index
    %c0_5 = arith.constant 0 : index
    %5 = vector.load %arg4[%c0_4, %c0_5] : memref<1x32xf32, #tpu.memory_space<vmem>>, vector<1x32xf32>
    %6 = vector.broadcast %5 : vector<1x32xf32> to vector<8x32xf32>
    %7 = arith.addf %4, %6 : vector<8x32xf32>
    %c0_6 = arith.constant 0 : index
    %c0_7 = arith.constant 0 : index
    %8 = vector.load %arg5[%c0_6, %c0_7] : memref<32x32xbf16, #tpu.memory_space<vmem>>, vector<32x32xbf16>
    %cst_8 = arith.constant dense<0.000000e+00> : vector<8x32xf32>
    %9 = tpu.matmul %2, %8, %cst_8 {dimension_numbers = #tpu.dot_dimension_numbers<[1], [0], [0], [1], [0, 0, 1, 1], [], []>} : vector<8x32xbf16>, vector<32x32xbf16>, vector<8x32xf32> -> vector<8x32xf32>
    %c0_9 = arith.constant 0 : index
    %c0_10 = arith.constant 0 : index
    %10 = vector.load %arg6[%c0_9, %c0_10] : memref<1x32xf32, #tpu.memory_space<vmem>>, vector<1x32xf32>
    %11 = vector.broadcast %10 : vector<1x32xf32> to vector<8x32xf32>
    %12 = arith.addf %9, %11 : vector<8x32xf32>
    %c0_11 = arith.constant 0 : index
    %c0_12 = arith.constant 0 : index
    %13 = vector.load %arg7[%c0_11, %c0_12] : memref<32x32xbf16, #tpu.memory_space<vmem>>, vector<32x32xbf16>
    %cst_13 = arith.constant dense<0.000000e+00> : vector<8x32xf32>
    %14 = tpu.matmul %2, %13, %cst_13 {dimension_numbers = #tpu.dot_dimension_numbers<[1], [0], [0], [1], [0, 0, 1, 1], [], []>} : vector<8x32xbf16>, vector<32x32xbf16>, vector<8x32xf32> -> vector<8x32xf32>
    %c0_14 = arith.constant 0 : index
    %c0_15 = arith.constant 0 : index
    %15 = vector.load %arg8[%c0_14, %c0_15] : memref<1x32xf32, #tpu.memory_space<vmem>>, vector<1x32xf32>
    %16 = vector.broadcast %15 : vector<1x32xf32> to vector<8x32xf32>
    %17 = arith.addf %14, %16 : vector<8x32xf32>
    %cst_16 = arith.constant 0.353553385 : f32
    %18 = vector.broadcast %cst_16 : f32 to vector<8x32xf32>
    %19 = arith.mulf %7, %18 : vector<8x32xf32>
    %20 = arith.truncf %19 : vector<8x32xf32> to vector<8x32xbf16>
    %c0_17 = arith.constant 0 : index
    %c0_18 = arith.constant 0 : index
    %c0_19 = arith.constant 0 : index
    %21 = vector.load %arg9[%c0_17, %c0_18, %c0_19] : memref<1x8x32xbf16, #tpu.memory_space<vmem>>, vector<1x8x32xbf16>
    %22 = vector.shape_cast %21 : vector<1x8x32xbf16> to vector<8x32xbf16>
    %23 = vector.shape_cast %20 : vector<8x32xbf16> to vector<1x8x32xbf16>
    tpu.vector_store %arg9[%c0_17, %c0_18, %c0_19], %23 {strides = array<i32>} : memref<1x8x32xbf16, #tpu.memory_space<vmem>>, vector<1x8x32xbf16>,
    %24 = arith.truncf %12 : vector<8x32xf32> to vector<8x32xbf16>
    %c0_20 = arith.constant 0 : index
    %c0_21 = arith.constant 0 : index
    %c0_22 = arith.constant 0 : index
    %25 = vector.load %arg10[%c0_20, %c0_21, %c0_22] : memref<1x8x32xbf16, #tpu.memory_space<vmem>>, vector<1x8x32xbf16>
    %26 = vector.shape_cast %25 : vector<1x8x32xbf16> to vector<8x32xbf16>
    %27 = vector.shape_cast %24 : vector<8x32xbf16> to vector<1x8x32xbf16>
    tpu.vector_store %arg10[%c0_20, %c0_21, %c0_22], %27 {strides = array<i32>} : memref<1x8x32xbf16, #tpu.memory_space<vmem>>, vector<1x8x32xbf16>,
    %28 = arith.truncf %17 : vector<8x32xf32> to vector<8x32xbf16>
    %c0_23 = arith.constant 0 : index
    %c0_24 = arith.constant 0 : index
    %c0_25 = arith.constant 0 : index
    %29 = vector.load %arg11[%c0_23, %c0_24, %c0_25] : memref<1x8x32xbf16, #tpu.memory_space<vmem>>, vector<1x8x32xbf16>
    %30 = vector.shape_cast %29 : vector<1x8x32xbf16> to vector<8x32xbf16>
    %31 = vector.shape_cast %28 : vector<8x32xbf16> to vector<1x8x32xbf16>
    tpu.vector_store %arg11[%c0_23, %c0_24, %c0_25], %31 {strides = array<i32>} : memref<1x8x32xbf16, #tpu.memory_space<vmem>>, vector<1x8x32xbf16>,
    return
  }
  func.func @transform_0(%arg0: i32, %arg1: i32) -> (i32, i32, i32) {
    %c0_i32 = arith.constant 0 : i32
    %c0_i32_0 = arith.constant 0 : i32
    return %arg0, %arg1, %c0_i32 : i32, i32, i32
  }
  func.func @transform_1(%arg0: i32, %arg1: i32) -> (i32, i32) {
    %c0_i32 = arith.constant 0 : i32
    %c0_i32_0 = arith.constant 0 : i32
    %c0_i32_1 = arith.constant 0 : i32
    return %c0_i32, %c0_i32_0 : i32, i32
  }
  func.func @transform_2(%arg0: i32, %arg1: i32) -> (i32, i32) {
    %c0_i32 = arith.constant 0 : i32
    %c0_i32_0 = arith.constant 0 : i32
    %c0_i32_1 = arith.constant 0 : i32
    return %c0_i32, %c0_i32_0 : i32, i32
  }
  func.func @transform_3(%arg0: i32, %arg1: i32) -> (i32, i32) {
    %c0_i32 = arith.constant 0 : i32
    %c0_i32_0 = arith.constant 0 : i32
    %c0_i32_1 = arith.constant 0 : i32
    return %c0_i32, %c0_i32_0 : i32, i32
  }
  func.func @transform_4(%arg0: i32, %arg1: i32) -> (i32, i32) {
    %c0_i32 = arith.constant 0 : i32
    %c0_i32_0 = arith.constant 0 : i32
    %c0_i32_1 = arith.constant 0 : i32
    return %c0_i32, %c0_i32_0 : i32, i32
  }
  func.func @transform_5(%arg0: i32, %arg1: i32) -> (i32, i32) {
    %c0_i32 = arith.constant 0 : i32
    %c0_i32_0 = arith.constant 0 : i32
    %c0_i32_1 = arith.constant 0 : i32
    return %c0_i32, %c0_i32_0 : i32, i32
  }
  func.func @transform_6(%arg0: i32, %arg1: i32) -> (i32, i32) {
    %c0_i32 = arith.constant 0 : i32
    %c0_i32_0 = arith.constant 0 : i32
    %c0_i32_1 = arith.constant 0 : i32
    return %c0_i32, %c0_i32_0 : i32, i32
  }
  func.func @transform_7(%arg0: i32, %arg1: i32) -> (i32, i32, i32) {
    %c0_i32 = arith.constant 0 : i32
    %c0_i32_0 = arith.constant 0 : i32
    return %arg0, %arg1, %c0_i32 : i32, i32, i32
  }
  func.func @transform_8(%arg0: i32, %arg1: i32) -> (i32, i32, i32) {
    %c0_i32 = arith.constant 0 : i32
    %c0_i32_0 = arith.constant 0 : i32
    return %arg0, %arg1, %c0_i32 : i32, i32, i32
  }
  func.func @transform_9(%arg0: i32, %arg1: i32) -> (i32, i32, i32) {
    %c0_i32 = arith.constant 0 : i32
    %c0_i32_0 = arith.constant 0 : i32
    return %arg0, %arg1, %c0_i32 : i32, i32, i32
  }
}

</mosaic_0001>

<bundles_post_ra>
// kernel: tpu_custom_call.1
= control target key start
LH: loop header
LB: loop body
LE: loop exit
PB: predicated region body
PF: predicated region fallthrough
CT: control target
= control target key end

     0   :  { %s1644_s0 = inlined_call_operand.hbm [shape: f32[2,8,32], index: 0, kind: input, shape index: {}]   ;;  %s1645_s1 = inlined_call_operand.hbm [shape: bf16[32,32], index: 1, kind: input, shape index: {}]   ;;  %s1646_s2 = inlined_call_operand.vmem [shape: f32[1,32], index: 2, kind: input, shape index: {}]   ;;  %s1647_s3 = inlined_call_operand.hbm [shape: bf16[32,32], index: 3, kind: input, shape index: {}]   ;;  %s1648_s4 = inlined_call_operand.vmem [shape: f32[1,32], index: 4, kind: input, shape index: {}]   ;;  %s1649_s5 = inlined_call_operand.vmem [shape: bf16[32,32], index: 5, kind: input, shape index: {}]   ;;  %s1650_s6 = inlined_call_operand.vmem [shape: f32[1,32], index: 6, kind: input, shape index: {}]   ;;  %s1651_s7 = inlined_call_operand.hbm [shape: bf16[2,8,32], index: 7, kind: output, shape index: {0}]   ;;  %s1652_s8 = inlined_call_operand.hbm [shape: bf16[2,8,32], index: 8, kind: output, shape index: {1}]   ;;  %s1653_s9 = inlined_call_operand.hbm [shape: bf16[2,8,32], index: 9, kind: output, shape index: {2}]  }
   0x1   :  { %1662 = sst [smem:[#allocation18_spill]] %s1644_s0 }
   0x2   :  { %1663 = sst [smem:[#allocation19_spill]] %s1645_s1 }
   0x3   :  { %1664 = sst [smem:[#allocation20_spill]] %s1653_s9 }
   0x4   :  { %15 = vsyncpa [#allocation3], 0 }
   0x5   :  { %17 = vsyncpa [#allocation3 + $0x1], 0 }
   0x6   :  { %18 = vsyncpa [#allocation6], 0 }
   0x7   :  { %19 = vsyncpa [#allocation4], 0 }
   0x8   :  { %21 = vsyncpa [#allocation4 + $0x1], 0 }
   0x9   :  { %22 = vsyncpa [#allocation10], 0 }
   0xa   :  { %24 = vsyncpa [#allocation10 + $0x1], 0  ;;  %s1300_s30 = smov 0   ;;  %s1302_s10 = smov 0  }
   0xb   :  { %s1304_s11 = smov 0   ;;  %s1306_s12 = smov 0  }
   0xc   :  { %s1308_s13 = smov 0   ;;  %s1310_s14 = smov 0  }
   0xd LB: > { %1665 = sst [smem:[#allocation16_spill]] %s1218_s30  ;;  %s1331_s15 = sadd.s32 4294967295, %s1238_s14   ;;  %s1238_s14 = sphi %s1310_s14, %s30_s14   ;;  %s1234_s13 = sphi %s1308_s13, %s1691_s13   ;;  %s1230_s12 = sphi %s1306_s12, %s1690_s12   ;;  %s1226_s11 = sphi %s1304_s11, %s1689_s11   ;;  %s1222_s10 = sphi %s1302_s10, %s1688_s10   ;;  %s1218_s30 = sphi %s1300_s30, %s1687_s30  }
   0xe   : > { %s1654_s16 = sadd.s32 4294967294, %s1238_s14   ;;  %p64_p0 = scmp.ne.s32.totalorder %s1222_s10, %s1218_s30 }
   0xf   : > { %p1655_p1 = scmp.eq.s32.totalorder %s1331_s15, 0  ;;  %p222_p3 = scmp.eq.s32.totalorder %s1654_s16, 1 }
  0x10   : > { %p837_p5 = scmp.ge.s32.totalorder %s1238_s14, 1  ;;  %p285_p7 = scmp.lt.s32.totalorder %s1238_s14, 3 }
  0x11   : > { %p1342_p4 = por %p1655_p1, %p64_p0  ;;  %p1347_p6 = por %p222_p3, %p64_p0 }
  0x12   : > { %p1352_p8 = pnand %p837_p5, %p285_p7  ;;  %s1240_s20 = smov [#allocation5]  }
  0x13   : > { %s1666_s17 = scalar_select %p1342_p4, 1, 0 }
  0x14   : > { %s1667_s18 = scalar_select %p1347_p6, 1, 0 }
  0x15   : > { %s297_s21 = sshll.u32 %s1240_s20, 4  ;;  %p919_p9 = pneg %p1352_p8  ;;  %s1356_s21 = int_to_ptr.vmem [resolvable:$true] %s297_s21 }
  0x16   : > { %1668 = sst [smem:[#allocation17_spill]] %s1667_s18  ;;  %s1241_s23 = smov [#allocation7]  }
  0x17   : > { %p1363_p11 = pnand %p919_p9, %p1655_p1  ;;  %s313_s24 = sshll.u32 %s1241_s23, 4  ;;  %s1367_s24 = int_to_ptr.vmem [resolvable:$true] %s313_s24 }
  0x18   : > { %s1671_s1 = sld [smem:[#allocation19_spill]] }
  0x19   : > { %p1008_p13 = pneg %p1363_p11 }
  0x1e   : > { %s1006_s27 = scalar_lea.hbm %s1671_s1, 256 }
  0x1f   : > { %p1007_p12 = scmp.ne.s32.totalorder %s1671_s1, %s1006_s27  ;;  %p1013_p5 = scmp.lt.u32.totalorder %s1006_s27, %s1671_s1 }
  0x21   : > { %p1009_p0 = pnand %p1008_p13, %p1007_p12 }
  0x23   : > { %p1010_p3 = pneg %p1009_p0 }
  0x25   : > { %p1015_p7 = pnand %p1013_p5, %p1010_p3 }
  0x27   : > { %1018 = shalt.err (!%p1015_p7)
}
  0x28   : > { %s1019_s23 = scalar_lea.vmem %s1356_s21, 256  ;;  %p1027_p2 = scmp.lt.s32.totalorder %s1356_s21, %s1356_s21 }
  0x29   : > { %p1020_p9 = scmp.ne.s32.totalorder %s1356_s21, %s1019_s23  ;;  %p1028_p12 = scmp.lt.s32.totalorder %s1019_s23, %s1019_s23 }
  0x2b   : > { %p1022_p10 = pnand %p1020_p9, %p1008_p13  ;;  %p1029_p0 = por %p1028_p12, %p1027_p2 }
  0x2d   : > { %p1023_p1 = pneg %p1022_p10 }
  0x2f   : > { %p1030_p6 = pnand %p1029_p0, %p1023_p1 }
  0x31   : > { %1033 = shalt.err (!%p1030_p6)
}
  0x32   : > { %s1242_s16 = smov 64   ;;  %s1243_s25 = smov 4  }
  0x33   : > { %922 = dma.hbm_to_vmem [thread:$0]  (!%p1363_p11), %s1671_s1, 256, %s1356_s21, [#allocation6], %s1242_s16, %s1242_s16, %s1243_s25  }
  0x34   : > { %s1034_s20 = scalar_lea.hbm %s1647_s3, 256 }
  0x35   : > { %p1035_p2 = scmp.ne.s32.totalorder %s1647_s3, %s1034_s20  ;;  %p1041_p10 = scmp.lt.u32.totalorder %s1034_s20, %s1647_s3 }
  0x37   : > { %p1037_p1 = pnand %p1035_p2, %p1008_p13 }
  0x39   : > { %p1038_p6 = pneg %p1037_p1 }
  0x3b   : > { %p1043_p3 = pnand %p1041_p10, %p1038_p6 }
  0x3d   : > { %1046 = shalt.err (!%p1043_p3)
}
  0x3e   : > { %s1047_s21 = scalar_lea.vmem %s1367_s24, 256  ;;  %p1055_p12 = scmp.lt.s32.totalorder %s1367_s24, %s1367_s24 }
  0x3f   : > { %p1048_p5 = scmp.ne.s32.totalorder %s1367_s24, %s1047_s21  ;;  %p1056_p0 = scmp.lt.s32.totalorder %s1047_s21, %s1047_s21 }
  0x41   : > { %p1050_p7 = pnand %p1048_p5, %p1008_p13  ;;  %p1057_p2 = por %p1056_p0, %p1055_p12 }
  0x43   : > { %p1051_p9 = pneg %p1050_p7 }
  0x45   : > { %p1058_p1 = pnand %p1057_p2, %p1051_p9 }
  0x47   : > { %1061 = shalt.err (!%p1058_p1)
}
  0x48   : > { %925 = dma.hbm_to_vmem [thread:$0]  (!%p1363_p11), %s1647_s3, 256, %s1367_s24, [#allocation6], %s1242_s16, %s1242_s16, %s1243_s25  }
  0x49   : > { %s42_s18 = sadd.s32 1, %s1234_s13  ;;  %s51_s26 = sadd.s32 1, %s1226_s11 }
  0x4a   : > { %p44_p13 = scmp.ge.s32.totalorder %s42_s18, 2  ;;  %p58_p6 = scmp.ne.s32.totalorder %s1226_s11, %s1222_s10 }
  0x4b   : > { %p59_p10 = scmp.eq.s32.totalorder %s1238_s14, 0  ;;  %p942_p3 = scmp.lt.s32.totalorder %s1238_s14, 2 }
  0x4c   : > { %s1693_s18 = smov (%p44_p13, %s42_s18), 0  ;;  %p1672_p7 = scmp.eq.s32.totalorder %s1331_s15, 1 }
  0x4d   : > { %p60_p5 = por %p59_p10, %p58_p6  ;;  %s46_s27 = ssub.s32 %s1234_s13, %s1693_s18 }
  0x4e   : > { %p1431_p9 = por %p1672_p7, %p58_p6  ;;  %s336_s28 = sand.u32 1, %s1226_s11  }
  0x4f   : > { %p49_p12 = scmp.eq.s32.totalorder %s46_s27, 0  ;;  %s841_s24 = sshll.u32 %s336_s28, 3 }
  0x50   : > { %s1673_s22 = scalar_select %p1431_p9, 1, 0 }
  0x51   : > { %s842_s16 = sshll.u32 %s1234_s13, 7  ;;  %s1674_s0 = sld [smem:[#allocation18_spill]] }
  0x52   : > { %s1440_s25 = scalar_select %p49_p12, %s1226_s11, %s51_s26  }
  0x53   : > { %s340_s21 = scalar_lea.vmem [#allocation2], %s841_s24  ;;  %p1449_p11 = pnand %p942_p3, %p60_p5 }
  0x54   : > { %s348_s9 = sshll.u32 %s340_s21, 4  ;;  %s337_s26 = scalar_lea.sflag [#allocation3], %s336_s28  ;;  %s1453_s9 = int_to_ptr.vmem [resolvable:$true] %s348_s9 }
  0x55   : > { %p1064_p2 = pneg %p1449_p11 }
  0x57   : > { %s1445_s23 = scalar_lea.hbm %s1674_s0, %s842_s16  ;;  %s1067_s29 = scalar_lea.hbm %s1674_s0, 256 }
  0x58   : > { %s1062_s27 = scalar_lea.hbm %s1445_s23, 128  ;;  %p1068_p6 = scmp.lt.u32.totalorder %s1445_s23, %s1674_s0 }
  0x59   : > { %p1063_p0 = scmp.ne.s32.totalorder %s1445_s23, %s1062_s27  ;;  %p1069_p10 = scmp.lt.u32.totalorder %s1067_s29, %s1062_s27 }
  0x5a   : > { %p1071_p5 = scmp.lt.u32.totalorder %s1062_s27, %s1445_s23 }
  0x5b   : > { %p1065_p1 = pnand %p1064_p2, %p1063_p0  ;;  %p1070_p3 = por %p1069_p10, %p1068_p6 }
  0x5d   : > { %p1066_p13 = pneg %p1065_p1  ;;  %p1072_p7 = por %p1071_p5, %p1070_p3 }
  0x5f   : > { %p1073_p12 = pnand %p1072_p7, %p1066_p13 }
  0x61   : > { %1076 = shalt.err (!%p1073_p12)
}
  0x62   : > { %s1077_s28 = scalar_lea.vmem %s1453_s9, 128  ;;  %s1244_s24 = smov [#allocation2]  }
  0x63   : > { %p1078_p0 = scmp.ne.s32.totalorder %s1453_s9, %s1077_s28  ;;  %s1082_s16 = sshll.u32 %s1244_s24, 4  ;;  %s1083_s16 = int_to_ptr.vmem [resolvable:$false] %s1082_s16 }
  0x64   : > { %s1084_s20 = scalar_lea.vmem %s1083_s16, 256  ;;  %p1085_p4 = scmp.lt.s32.totalorder %s1453_s9, %s1083_s16 }
  0x65   : > { %p1080_p1 = pnand %p1078_p0, %p1064_p2  ;;  %p1086_p6 = scmp.lt.s32.totalorder %s1084_s20, %s1077_s28 }
  0x67   : > { %p1081_p9 = pneg %p1080_p1  ;;  %p1087_p10 = por %p1086_p6, %p1085_p4 }
  0x69   : > { %p1088_p3 = pnand %p1087_p10, %p1081_p9 }
  0x6b   : > { %1091 = shalt.err (!%p1088_p3)
}
  0x6c   : > { %929 = dma.hbm_to_vmem [thread:$0]  (!%p1449_p11), %s1445_s23, 128, %s1453_s9, %s337_s26  }
  0x6d   : > { %357 = sbr.rel (%p1352_p8) target bundleno = 410 (0x19a), region = 48  ;;  %s1483_s27 = sand.u32 (!%p1352_p8), 1, %s1222_s10  }
  0x6e   : > { %s844_s29 = sshll.u32 (!%p1352_p8), %s1483_s27, 3  ;;  %s360_s21 = scalar_lea.sflag (!%p1352_p8), [#allocation3], %s1483_s27 }
  0x6f   : > { %s363_s28 = scalar_lea.vmem (!%p1352_p8), [#allocation2], %s844_s29  ;;  %p1676_p4 = scmp.ne.s32.totalorder (!%p1352_p8), %s1666_s17, 0 }
  0x74   : > { %1201 = dma.done.wait (%p1676_p4), %s360_s21, 128  }
  0x75   : > { %1203 = vsyncadd (%p1676_p4), %s360_s21, 4294967168  ;;  %p1677_p9 = scmp.eq.s32.totalorder %s1331_s15, 0 }
  0x77   : > { %1205 = dma.done.wait (%p1677_p9), [#allocation6], 512   ;;  %p1678_p11 = pmov %p1677_p9 }
  0x78   : > { %v1245_v0 = vmov 0.0   ;;  %vm1246_vm0 = vmmov 0   ;;  %v1000_v1 = vld [vmem:[#allocation5] sm:$0xff]   ;;  %v1001_v2 = vld [vmem:[#allocation5 + $0x8] sm:$0xff]   ;;  %v1002_v3 = vld [vmem:[#allocation7] sm:$0xff]   ;;  %vm442_vm1 = vcmask 261120  }
  0x79   : > { %1207 = vsyncadd (%p1678_p11), [#allocation6], 4294966784  ;;  %879 = vmatprep.subr.bf16.mxu0 %v1245_v0  ;;  %887 = vmatprep.subr.bf16.mxu1 %v1245_v0  ;;  %v417_v4 = vld [vmem:[%s363_s28] sm:$0xff]  ;;  %s1508_s24 = sshll.u32 %s1483_s27, 2  ;;  %s625_s29 = sand.u32 1, %s1331_s15   ;;  %vm614_vm2 = vcmask 257024  }
  0x7a   : > { %883 = vmatprep.mubr.msk.bf16.mxu0 %vm1246_vm0, %v1245_v0  ;;  %891 = vmatprep.mubr.msk.bf16.mxu1 %vm1246_vm0, %v1245_v0  ;;  %v418_v5 = vpack.c.bf16 %v417_v4, %v417_v4  ;;  %v1004_v6 = vld [vmem:[#allocation7 + $0x8] sm:$0xff]   ;;  %v1003_v7 = vld [vmem:[%s1649_s5] sm:$0xff]   ;;  %s1515_s21 = sshll.u32 %s1230_s12, 6  ;;  %s408_s28 = scalar_lea.vmem [#allocation9], %s1508_s24 }
  0x7b   : > { %880 = vmatpush3.bf16.msra.mxu0 %v1000_v1  ;;  %888 = vmatpush3.bf16.msra.mxu1 %v1002_v3  ;;  %v1005_v8 = vld [vmem:[%s1649_s5 + $0x8] sm:$0xff]   ;;  %v850_v9 = vld [vmem:[%s1646_s2] ss:$0 sm:$0xff]  ;;  %s659_s17 = sshll.u32 %s408_s28, 4  ;;  %s401_s19 = scalar_lea.vmem [#allocation8], %s1508_s24  ;;  %s1525_s17 = int_to_ptr.vmem [resolvable:$true] %s659_s17 }
  0x7c   : > { %881 = vmatprep.subr.bf16.mxu0 %v1245_v0  ;;  %889 = vmatprep.subr.bf16.mxu1 %v1245_v0  ;;  %v854_v11 = vld [vmem:[%s1648_s4] ss:$0 sm:$0xff]  ;;  %s645_s23 = sshll.u32 %s401_s19, 4  ;;  %s1523_s12 = scalar_lea.hbm %s1652_s8, %s1515_s21  ;;  %s1536_s23 = int_to_ptr.vmem [resolvable:$true] %s645_s23 }
  0x7d   : > { %v858_v24 = vld [vmem:[%s1650_s6] ss:$0 sm:$0xff]  ;;  %s1534_s0 = scalar_lea.hbm %s1651_s7, %s1515_s21  ;;  %s1661_s15 = scalar_lea.vmem [#allocation11], %s1508_s24 }
  0x7e   : > { %s1543_s9 = sshll.u32 %s1661_s15, 4  ;;  %s1545_s30 = scalar_lea.sflag [#allocation10], %s625_s29  ;;  %s674_s9 = int_to_ptr.vmem [resolvable:$true] %s1543_s9 }
  0x7f   : > { %882 = vmatpush3.bf16.msra.mxu0 %v1001_v2  ;;  %890 = vmatpush3.bf16.msra.mxu1 %v1004_v6  ;;  %s1092_s26 = scalar_lea.vmem %s1525_s17, 64  ;;  %p1679_p2 = scmp.ne.s32.totalorder %s1673_s22, 0 }
  0x80   : > { %895 = vmatprep.subr.bf16.mxu0 %v1245_v0  ;;  %p1093_p8 = scmp.ne.s32.totalorder %s1525_s17, %s1092_s26  ;;  %s1247_s16 = smov [#allocation9]  }
  0x81   : > { %s1096_s20 = sshll.u32 %s1247_s16, 4  ;;  %s1097_s20 = int_to_ptr.vmem [resolvable:$false] %s1096_s20 }
  0x82   : > { %884 = vmatmul.mubr.msk.bf16.vlgmr.msra.gmra.mrb[0].mxu0 %vm442_vm1, %v418_v5  ;;  %892 = vmatmul.mubr.msk.bf16.vlgmr.msra.gmra.mrb[0].mxu1 %vm442_vm1, %v418_v5  ;;  %p1094_p13 = pnand %p1093_p8, %p1679_p2  ;;  %s1098_s1 = scalar_lea.vmem %s1097_s20, 128 }
  0x83   : > { %896 = vmatpush3.bf16.msra.mxu0 %v1003_v7  ;;  %899 = vmatprep.mubr.msk.bf16.mxu0 %vm1246_vm0, %v1245_v0  ;;  %p1099_p7 = scmp.lt.s32.totalorder %s1525_s17, %s1097_s20  ;;  %p1100_p12 = scmp.lt.s32.totalorder %s1098_s1, %s1092_s26 }
  0x84   : > { %897 = vmatprep.subr.bf16.mxu0 %v1245_v0  ;;  %p1095_p5 = pneg %p1094_p13 }
  0x85   : > { %p1101_p0 = por %p1100_p12, %p1099_p7 }
  0x87   : > { %898 = vmatpush3.bf16.msra.mxu0 %v1005_v8  ;;  %p1102_p1 = pnand %p1101_p0, %p1095_p5 }
  0x8a   : > { %900 = vmatmul.mubr.msk.bf16.vlgmr.msra.gmra.mrb[4].mxu0 %vm442_vm1, %v418_v5 }
 0x155   : > { %v480_v10 = vpop.f32.mrb[0].mxu0  ;;  %v543_v15 = vpop.f32.mrb[0].mxu1 }
 0x156   : > { %v481_v12 = vadd.f32 %v850_v9, %v480_v10  ;;  %v885_v13 = vpop.f32.mrb[1].mxu0  ;;  %v544_v18 = vadd.f32 %v854_v11, %v543_v15  ;;  %v893_v19 = vpop.f32.mrb[1].mxu1 }
 0x157   : > { %v483_v14 = vpop.f32.mrb[2].mxu0  ;;  %v546_v20 = vpop.f32.mrb[2].mxu1 }
 0x158   : > { %v612_v16 = vmul.f32 0.35355338, %v481_v12  ;;  %v886_v17 = vpop.f32.mrb[3].mxu0  ;;  %v616_v22 = vpack.c.bf16 %v544_v18, %v544_v18  ;;  %v894_v23 = vpop.f32.mrb[3].mxu1 }
 0x15a   : > { %v613_v21 = vpack.c.bf16 %v612_v16, %v612_v16  ;;  %617 = vst.msk [vmem:[%s408_s28] sm:$0xf] %vm614_vm2, %v616_v22 }
 0x15c   : > { %615 = vst.msk [vmem:[%s401_s19] sm:$0xf] %vm614_vm2, %v613_v21 }
 0x15d   : > { %v606_v25 = vpop.f32.mrb[4].mxu0 }
 0x15e   : > { %1105 = shalt.err (!%p1102_p1)
}
 0x15f   : > { %s1106_s29 = scalar_lea.hbm %s1523_s12, 64  ;;  %s1110_s16 = scalar_lea.hbm %s1652_s8, 128 }
 0x160   : > { %p1107_p6 = scmp.ne.s32.totalorder %s1523_s12, %s1106_s29  ;;  %p1111_p4 = scmp.lt.u32.totalorder %s1523_s12, %s1652_s8 }
 0x161   : > { %p1112_p9 = scmp.lt.u32.totalorder %s1110_s16, %s1106_s29  ;;  %p1114_p8 = scmp.lt.u32.totalorder %s1106_s29, %s1523_s12 }
 0x162   : > { %p1108_p10 = pnand %p1107_p6, %p1679_p2 }
 0x163   : > { %p1113_p11 = por %p1112_p9, %p1111_p4 }
 0x164   : > { %p1109_p3 = pneg %p1108_p10 }
 0x165   : > { %p1115_p13 = por %p1114_p8, %p1113_p11 }
 0x167   : > { %p1116_p5 = pnand %p1115_p13, %p1109_p3 }
 0x169   : > { %1119 = shalt.err (!%p1116_p5)
}
 0x16a   : > { %914 = dma.vmem_to_hbm [thread:$0]  (%p1679_p2), %s1525_s17, 64, %s1523_s12, %s1545_s30   ;;  %v607_v26 = vadd.f32 %v858_v24, %v606_v25  ;;  %v901_v27 = vpop.f32.mrb[5].mxu0 }
 0x16b   : > { %s621_s1 = scalar_lea.sflag [#allocation4], %s1483_s27  ;;  %s1120_s15 = scalar_lea.vmem %s1536_s23, 64 }
 0x16c   : > { %p1121_p7 = scmp.ne.s32.totalorder %s1536_s23, %s1120_s15  ;;  %s1248_s26 = smov [#allocation8]  }
 0x16d   : > { %s1124_s29 = sshll.u32 %s1248_s26, 4  ;;  %s1125_s29 = int_to_ptr.vmem [resolvable:$false] %s1124_s29 }
 0x16e   : > { %p1122_p12 = pnand %p1121_p7, %p1679_p2  ;;  %s1126_s28 = scalar_lea.vmem %s1125_s29, 128 }
 0x16f   : > { %p1127_p1 = scmp.lt.s32.totalorder %s1536_s23, %s1125_s29  ;;  %p1128_p6 = scmp.lt.s32.totalorder %s1126_s28, %s1120_s15 }
 0x170   : > { %p1123_p0 = pneg %p1122_p12 }
 0x171   : > { %p1129_p10 = por %p1128_p6, %p1127_p1 }
 0x173   : > { %p1130_p3 = pnand %p1129_p10, %p1123_p0 }
 0x175   : > { %1133 = shalt.err (!%p1130_p3)
}
 0x176   : > { %s1134_s27 = scalar_lea.hbm %s1534_s0, 64  ;;  %s1138_s19 = scalar_lea.hbm %s1651_s7, 128 }
 0x177   : > { %p1135_p4 = scmp.ne.s32.totalorder %s1534_s0, %s1134_s27  ;;  %p1139_p8 = scmp.lt.u32.totalorder %s1534_s0, %s1651_s7 }
 0x178   : > { %p1140_p13 = scmp.lt.u32.totalorder %s1138_s19, %s1134_s27  ;;  %p1142_p7 = scmp.lt.u32.totalorder %s1134_s27, %s1534_s0 }
 0x179   : > { %p1136_p9 = pnand %p1135_p4, %p1679_p2 }
 0x17a   : > { %p1141_p5 = por %p1140_p13, %p1139_p8 }
 0x17b   : > { %p1137_p11 = pneg %p1136_p9 }
 0x17c   : > { %p1143_p12 = por %p1142_p7, %p1141_p5 }
 0x17e   : > { %p1144_p0 = pnand %p1143_p12, %p1137_p11 }
 0x180   : > { %1147 = shalt.err (!%p1144_p0)
}
 0x181   : > { %913 = dma.vmem_to_hbm [thread:$0]  (%p1679_p2), %s1536_s23, 64, %s1534_s0, %s621_s1   ;;  %v609_v28 = vpop.f32.mrb[6].mxu0  ;;  %v618_v29 = vpack.c.bf16 %v607_v26, %v607_v26 }
 0x182   : > { %v902_v30 = vpop.f32.mrb[7].mxu0  ;;  %s1680_s29 = sld [smem:[#allocation20_spill]]  ;;  %s1681_s27 = scalar_lea.vmem [#allocation11], %s1508_s24 }
 0x183   : > { %619 = vst.msk [vmem:[%s1681_s27] sm:$0xf] %vm614_vm2, %v618_v29  ;;  %s1148_s17 = scalar_lea.vmem %s674_s9, 64  ;;  %s1249_s12 = smov [#allocation11]  }
 0x184   : > { %p1149_p1 = scmp.ne.s32.totalorder %s674_s9, %s1148_s17  ;;  %s1152_s19 = sshll.u32 %s1249_s12, 4  ;;  %s1153_s19 = int_to_ptr.vmem [resolvable:$false] %s1152_s19 }
 0x185   : > { %s1154_s0 = scalar_lea.vmem %s1153_s19, 128  ;;  %p1155_p3 = scmp.lt.s32.totalorder %s674_s9, %s1153_s19 }
 0x186   : > { %p1150_p6 = pnand %p1149_p1, %p1679_p2  ;;  %p1156_p4 = scmp.lt.s32.totalorder %s1154_s0, %s1148_s17 }
 0x188   : > { %s1595_s28 = scalar_lea.hbm %s1680_s29, %s1515_s21  ;;  %p1151_p10 = pneg %p1150_p6 }
 0x189   : > { %p1157_p9 = por %p1156_p4, %p1155_p3 }
 0x18b   : > { %p1158_p11 = pnand %p1157_p9, %p1151_p10 }
 0x18d   : > { %1161 = shalt.err (!%p1158_p11)
}
 0x18e   : > { %s1162_s24 = scalar_lea.hbm %s1595_s28, 64  ;;  %s1166_s1 = scalar_lea.hbm %s1680_s29, 128 }
 0x18f   : > { %p1163_p8 = scmp.ne.s32.totalorder %s1595_s28, %s1162_s24  ;;  %p1167_p7 = scmp.lt.u32.totalorder %s1595_s28, %s1680_s29 }
 0x190   : > { %p1168_p12 = scmp.lt.u32.totalorder %s1166_s1, %s1162_s24  ;;  %p1170_p1 = scmp.lt.u32.totalorder %s1162_s24, %s1595_s28 }
 0x191   : > { %p1164_p13 = pnand %p1163_p8, %p1679_p2 }
 0x192   : > { %p1169_p0 = por %p1168_p12, %p1167_p7 }
 0x193   : > { %p1165_p5 = pneg %p1164_p13 }
 0x194   : > { %p1171_p6 = por %p1170_p1, %p1169_p0 }
 0x196   : > { %p1172_p10 = pnand %p1171_p6, %p1165_p5 }
 0x198   : > { %1175 = shalt.err (!%p1172_p10)
}
 0x199   : > { %915 = dma.vmem_to_hbm [thread:$0]  (%p1679_p2), %s674_s9, 64, %s1595_s28, %s1545_s30  }
 0x19a PF: > { %s1682_s15 = sld [smem:[#allocation16_spill]]  ;;  %s1683_s26 = sld [smem:[#allocation17_spill]] }
 0x19b   : > { %p1685_p4 = scmp.ge.s32.totalorder %s1238_s14, 2 }
 0x1a0   : > { %s685_s27 = sand.u32 1, %s1682_s15   ;;  %p1684_p3 = scmp.ne.s32.totalorder %s1683_s26, 0 }
 0x1a1   : > { %s686_s17 = scalar_lea.sflag [#allocation4], %s685_s27 }
 0x1a2   : > { %p931_p9 = pnand %p1685_p4, %p1684_p3 }
 0x1a4   : > { %1209 = dma.done.wait (!%p931_p9), %s686_s17, 64  }
 0x1a5   : > { %1211 = vsyncadd (!%p931_p9), %s686_s17, 4294967232  ;;  %s1686_s12 = sadd.s32 4294967294, %s1238_s14  }
 0x1a6   : > { %s694_s19 = sand.u32 1, %s1686_s12  }
 0x1a7   : > { %s695_s0 = scalar_lea.sflag [#allocation10], %s694_s19 }
 0x1a8   : > { %1213 = dma.done.wait (!%p931_p9), %s695_s0, 128  }
 0x1a9   : > { %1215 = vsyncadd (!%p931_p9), %s695_s0, 4294967168  ;;  %s30_s14 = sadd.s32 1, %s1238_s14   ;;  %s1687_s30 = smov %s1222_s10 }
 0x1aa   : > { %p27_p2 = scmp.ge.s32.totalorder %s30_s14, 4   ;;  %s1688_s10 = smov %s1226_s11 }
 0x1ab   : > { %s1689_s11 = smov %s1440_s25  ;;  %s1690_s12 = smov %s1234_s13 }
 0x1ac   : > { %s1691_s13 = smov %s1693_s18  ;;  %29 = sbr.rel (!%p27_p2) target bundleno = 13 (0xd), region = 133 }
 0x1b3   :  { %709 = vsyncpa [#allocation3], 1 }
 0x1b4   :  { %711 = vsyncpa [#allocation3 + $0x1], 1 }
 0x1b5   :  { %712 = vsyncpa [#allocation6], 1 }
 0x1b6   :  { %713 = vsyncpa [#allocation4], 1 }
 0x1b7   :  { %715 = vsyncpa [#allocation4 + $0x1], 1 }
 0x1b8   :  { %716 = vsyncpa [#allocation10], 1 }
 0x1b9   :  { %718 = vsyncpa [#allocation10 + $0x1], 1 }

</bundles_post_ra>
